<compile_context>
chip_gen: v5e
topology: v5e:2x2
jax: 0.10.0
libtpu: 0.0.40
codegen_flags: <defaults>
</compile_context>

<pallas_src>
import functools

import numpy as np

import jax
import jax.numpy as jnp
from jax.experimental import pallas as pl
from jax.experimental.pallas import tpu as pltpu


# ----------------------------------------------------------------------------
# Host-side selection tensors (pure functions of static shapes)
# ----------------------------------------------------------------------------
def _sel_h2h(W):
    # rows (r, w_in), cols (hi, w_out); full-res conv, row-halo slot r = hi + kh
    r = np.arange(4)[:, None, None, None, None, None]
    a = np.arange(W)[None, :, None, None, None, None]
    h = np.arange(2)[None, None, :, None, None, None]
    u = np.arange(W)[None, None, None, :, None, None]
    p = np.arange(3)[None, None, None, None, :, None]
    q = np.arange(3)[None, None, None, None, None, :]
    return ((p == r - h) & (q == a - u + 1)).astype(np.float32)       # (4,W,2,W,3,3)


def _sel_h2l(W, Wl):
    # rows (r, w_in), cols (wl_out); 2x2 avg-pool folded in (0.25 per (hi,wi))
    r = np.arange(4)[:, None, None, None, None]
    a = np.arange(W)[None, :, None, None, None]
    v = np.arange(Wl)[None, None, :, None, None]
    p = np.arange(3)[None, None, None, :, None]
    q = np.arange(3)[None, None, None, None, :]
    S = np.zeros((4, W, Wl, 3, 3), np.float32)
    for hi in range(2):
        for wi in range(2):
            S += 0.25 * ((p == r - hi) & (q == a + 1 - (2 * v + wi))).astype(np.float32)
    return S                                                          # (4,W,Wl,3,3)


def _sel_l2h(W, Wl):
    # rows (r, wl_in), cols (hi, w_out); nearest x2 upsample folded in (hi-duplicated)
    r = np.arange(3)[:, None, None, None, None, None]
    b = np.arange(Wl)[None, :, None, None, None, None]
    u = np.arange(W)[None, None, None, :, None, None]
    p = np.arange(3)[None, None, None, None, :, None]
    q = np.arange(3)[None, None, None, None, None, :]
    s = ((p == r) & (q == b + 1 - u // 2)).astype(np.float32)          # (3,Wl,1,W,3,3)
    return np.broadcast_to(s, (3, Wl, 2, W, 3, 3)).copy()


def _sel_l2l(Wl):
    r = np.arange(3)[:, None, None, None, None]
    b = np.arange(Wl)[None, :, None, None, None]
    v = np.arange(Wl)[None, None, :, None, None]
    p = np.arange(3)[None, None, None, :, None]
    q = np.arange(3)[None, None, None, None, :]
    return ((p == r) & (q == b - v + 1)).astype(np.float32)            # (3,Wl,Wl,3,3)


# ----------------------------------------------------------------------------
# Host-side weight / bias folding (jittable; S tensors are trace-time constants)
# ----------------------------------------------------------------------------
def _fold_weights(params, W, Wl, Ch, Cl, h_oc, l_oc):
    A_h2h = jnp.einsum("rahupq,pqco->rachuo", _sel_h2h(W), params["w_h2h"]
                       ).reshape(4 * W * Ch, 2 * W * h_oc)
    A_h2l = jnp.einsum("ravpq,pqco->racvo", _sel_h2l(W, Wl), params["w_h2l"]
                       ).reshape(4 * W * Ch, Wl * l_oc)
    A_l2h = jnp.einsum("rbhupq,pqco->rbchuo", _sel_l2h(W, Wl), params["w_l2h"]
                       ).reshape(3 * Wl * Cl, 2 * W * h_oc)
    A_l2l = jnp.einsum("rbvpq,pqco->rbcvo", _sel_l2l(Wl), params["w_l2l"]
                       ).reshape(3 * Wl * Cl, Wl * l_oc)
    W_full = jnp.concatenate(
        [jnp.concatenate([A_h2h, A_h2l], axis=1),
         jnp.concatenate([A_l2h, A_l2l], axis=1)], axis=0)             # (K, NC)
    b_full = jnp.concatenate(
        [jnp.tile(params["b_h2h"] + params["b_l2h"], 2 * W),
         jnp.tile(params["b_h2l"] + params["b_l2l"], Wl)]
    ).astype(jnp.float32).reshape(1, -1)                               # (1, NC) fp32
    return W_full, b_full


def _im2col(h_x, l_x):
    """Build the (N*H/2, 4*W*Ch + 3*Wl*Cl) LHS slab (wrapper-side layout plumbing)."""
    N, H, W, Ch = h_x.shape
    _, Hl, Wl, Cl = l_x.shape
    xh = jnp.pad(h_x.reshape(N, H, W * Ch), ((0, 0), (1, 1), (0, 0)))   # (N, H+2,  W*Ch)
    xl = jnp.pad(l_x.reshape(N, Hl, Wl * Cl), ((0, 0), (1, 1), (0, 0)))  # (N, Hl+2, Wl*Cl)
    parts = [xh[:, r:r + 2 * Hl:2, :] for r in range(4)]    # 4-row high halo per hl
    parts += [xl[:, r:r + Hl, :] for r in range(3)]         # 3-row low  halo per hl
    return jnp.concatenate(parts, axis=-1).reshape(N * Hl, -1)


# ----------------------------------------------------------------------------
# Fused kernel: one dot + bias + relu + two lane-sliced stores
# ----------------------------------------------------------------------------
def _make_kernel(nc_high):
    def kernel(x_ref, w_ref, b_ref, ho_ref, lo_ref):
        acc = jnp.dot(x_ref[...], w_ref[...], preferred_element_type=jnp.float32)
        out = jnp.maximum(acc + b_ref[...], 0.0)
        ho_ref[...] = out[:, :nc_high].astype(ho_ref.dtype)   # 128-lane unmasked store
        lo_ref[...] = out[:, nc_high:].astype(lo_ref.dtype)   # 32-lane (small) store
    return kernel


# ----------------------------------------------------------------------------
# Forward wrapper
# ----------------------------------------------------------------------------
def oct_conv_mid_block(h_x, l_x, params, *, compute_dtype=jnp.bfloat16, row_block=None):
    """h_x: (N, H, W, Ch_in), l_x: (N, H/2, W/2, Cl_in), NHWC.  3x3 / stride 1 / pad 1."""
    N, H, W, Ch = h_x.shape
    Nl, Hl, Wl, Cl = l_x.shape
    assert N == Nl and H == 2 * Hl and W == 2 * Wl
    assert params["w_h2h"].shape[:2] == (3, 3)
    h_oc = params["w_h2h"].shape[-1]
    l_oc = params["w_h2l"].shape[-1]

    NC_high = 2 * W * h_oc                 # high-output cols, layout (hi, w, c)
    NC_low = Wl * l_oc                     # low-output cols,  layout (wl, c)
    NC = NC_high + NC_low
    KC = 4 * W * Ch + 3 * Wl * Cl

    W_full, b_full = _fold_weights(params, W, Wl, Ch, Cl, h_oc, l_oc)
    W_full = W_full.astype(compute_dtype)
    X = _im2col(h_x, l_x).astype(compute_dtype)               # (rows, KC)

    rows = N * Hl
    if row_block is None:
        row_block = rows if rows <= 512 else 512
    out_dtype = h_x.dtype

    # True conv FLOPs (not the folded-Toeplitz count) + actual bytes moved.
    flops = 2 * 9 * (N * H * W * Ch + N * Hl * Wl * Cl) * (h_oc + l_oc)
    in_item = np.dtype(compute_dtype).itemsize
    out_item = np.dtype(out_dtype).itemsize
    bytes_accessed = int((X.size + W_full.size) * in_item + b_full.size * 4
                         + rows * NC * out_item)

    h_flat, l_flat = pl.pallas_call(
        _make_kernel(NC_high),
        out_shape=(jax.ShapeDtypeStruct((rows, NC_high), out_dtype),
                   jax.ShapeDtypeStruct((rows, NC_low), out_dtype)),
        grid=(pl.cdiv(rows, row_block),),
        in_specs=[
            pl.BlockSpec((row_block, KC), lambda i: (i, 0)),
            pl.BlockSpec((KC, NC), lambda i: (0, 0)),     # constant operands; at larger
            pl.BlockSpec((1, NC), lambda i: (0, 0)),      # grids use pl.Buffered(1)
        ],
        out_specs=(pl.BlockSpec((row_block, NC_high), lambda i: (i, 0)),
                   pl.BlockSpec((row_block, NC_low), lambda i: (i, 0))),
        compiler_params=pltpu.CompilerParams(dimension_semantics=("parallel",)),
        cost_estimate=pl.CostEstimate(flops=flops, transcendentals=0,
                                      bytes_accessed=bytes_accessed),
    )(X, W_full, b_full)

    # Free HBM reshapes: high rows are (n, hl) with cols (hi, w, c) -> NHWC directly.
    return (h_flat.reshape(N, H, W, h_oc), l_flat.reshape(N, Hl, Wl, l_oc))


# ---------------- pure-JAX reference (for correctness check only) ----------------
def _conv_ref(x, w, b):
    out = jax.lax.conv_general_dilated(
        x, w, window_strides=(1, 1), padding=((1, 1), (1, 1)),
        dimension_numbers=("NHWC", "HWIO", "NHWC"))
    return out + b.reshape(1, 1, 1, -1)


def _oct_ref(h_x, l_x, p):
    h2h = _conv_ref(h_x, p["w_h2h"], p["b_h2h"])
    h2l = _conv_ref(h_x, p["w_h2l"], p["b_h2l"])
    N, H, W, C = h2l.shape
    h2l = h2l.reshape(N, H // 2, 2, W // 2, 2, C).mean(axis=(2, 4))    # avg_pool2d(2)
    l2h = _conv_ref(l_x, p["w_l2h"], p["b_l2h"])
    l2h = jnp.repeat(jnp.repeat(l2h, 2, axis=1), 2, axis=2)            # nearest x2
    l2l = _conv_ref(l_x, p["w_l2l"], p["b_l2l"])
    return jnp.maximum(h2h + l2h, 0.0), jnp.maximum(h2l + l2l, 0.0)


if __name__ == "__main__":
    key = jax.random.PRNGKey(0)
    ks = jax.random.split(key, 10)

    # module config: in_channels=8, out_channels=8, k=3, stride=1, pad=1, alpha=0.5
    N, H, W = 2, 16, 16
    in_ch, out_ch, alpha = 8, 8, 0.5
    h_in, l_in = int((1 - alpha) * in_ch), int(alpha * in_ch)
    h_oc, l_oc = int((1 - alpha) * out_ch), int(alpha * out_ch)

    h_x = jax.random.normal(ks[0], (N, H, W, h_in), jnp.float32)
    l_x = jax.random.normal(ks[1], (N, H // 2, W // 2, l_in), jnp.float32)

    def wgt(k, cin, cout):
        return 0.1 * jax.random.normal(k, (3, 3, cin, cout), jnp.float32)

    params = dict(
        w_h2h=wgt(ks[2], h_in, h_oc), b_h2h=0.1 * jax.random.normal(ks[3], (h_oc,), jnp.float32),
        w_h2l=wgt(ks[4], h_in, l_oc), b_h2l=0.1 * jax.random.normal(ks[5], (l_oc,), jnp.float32),
        w_l2h=wgt(ks[6], l_in, h_oc), b_l2h=0.1 * jax.random.normal(ks[7], (h_oc,), jnp.float32),
        w_l2l=wgt(ks[8], l_in, l_oc), b_l2l=0.1 * jax.random.normal(ks[9], (l_oc,), jnp.float32),
    )

    h_r, l_r = _oct_ref(h_x, l_x, params)

    # f32 path: validates the folded-weight / im2col math tightly.
    fwd_f32 = jax.jit(functools.partial(oct_conv_mid_block, compute_dtype=jnp.float32))
    h_o, l_o = fwd_f32(h_x, l_x, params)
    jax.block_until_ready((h_o, l_o))
    assert h_o.shape == (N, H, W, h_oc) and l_o.shape == (N, H // 2, W // 2, l_oc)
    assert bool(jnp.allclose(h_o, h_r, atol=1e-3, rtol=1e-3))
    assert bool(jnp.allclose(l_o, l_r, atol=1e-3, rtol=1e-3))

    # bf16 path (shipping default): native MXU rate on v6e/v7x, half the weight DMA.
    fwd_bf16 = jax.jit(oct_conv_mid_block)
    h_b, l_b = fwd_bf16(h_x, l_x, params)
    jax.block_until_ready((h_b, l_b))
    assert bool(jnp.allclose(h_b, h_r, atol=1e-1, rtol=1e-1))
    assert bool(jnp.allclose(l_b, l_r, atol=1e-1, rtol=1e-1))

    print("KERNEL_OK")
</pallas_src>

<mosaic_0001>
module attributes {stable_mosaic.version = 11 : i64} {
  func.func @kernel(%arg0: i32, %arg1: memref<16x352xf32, #tpu.memory_space<vmem>>, %arg2: memref<352x160xf32, #tpu.memory_space<vmem>>, %arg3: memref<1x160xf32, #tpu.memory_space<vmem>>, %arg4: memref<16x128xf32, #tpu.memory_space<vmem>>, %arg5: memref<16x32xf32, #tpu.memory_space<vmem>>) attributes {dimension_semantics = [#tpu.dimension_semantics<parallel>], iteration_bounds = array<i64: 1>, scalar_prefetch = 0 : i64, scratch_operands = 0 : i64, tpu.core_type = #tpu.core_type<tc>, window_params = [{transform_indices = @transform_0, window_bounds = array<i64: 16, 352>}, {pipeline_mode = #tpu.pipeline_mode<synchronous>, transform_indices = @transform_1, window_bounds = array<i64: 352, 160>}, {pipeline_mode = #tpu.pipeline_mode<synchronous>, transform_indices = @transform_2, window_bounds = array<i64: 1, 160>}, {transform_indices = @transform_3, window_bounds = array<i64: 16, 128>}, {transform_indices = @transform_4, window_bounds = array<i64: 16, 32>}]} {
    %c0 = arith.constant 0 : index
    %c0_0 = arith.constant 0 : index
    %0 = vector.load %arg1[%c0, %c0_0] : memref<16x352xf32, #tpu.memory_space<vmem>>, vector<16x352xf32>
    %c0_1 = arith.constant 0 : index
    %c0_2 = arith.constant 0 : index
    %1 = vector.load %arg2[%c0_1, %c0_2] : memref<352x160xf32, #tpu.memory_space<vmem>>, vector<352x160xf32>
    %cst = arith.constant dense<0.000000e+00> : vector<16x160xf32>
    %2 = tpu.matmul %0, %1, %cst {dimension_numbers = #tpu.dot_dimension_numbers<[1], [0], [0], [1], [0, 0, 1, 1], [], []>} : vector<16x352xf32>, vector<352x160xf32>, vector<16x160xf32> -> vector<16x160xf32>
    %c0_3 = arith.constant 0 : index
    %c0_4 = arith.constant 0 : index
    %3 = vector.load %arg3[%c0_3, %c0_4] : memref<1x160xf32, #tpu.memory_space<vmem>>, vector<1x160xf32>
    %4 = vector.broadcast %3 : vector<1x160xf32> to vector<16x160xf32>
    %5 = arith.addf %2, %4 : vector<16x160xf32>
    %cst_5 = arith.constant 0.000000e+00 : f32
    %6 = vector.broadcast %cst_5 : f32 to vector<16x160xf32>
    %7 = arith.maximumf %5, %6 : vector<16x160xf32>
    %8 = vector.extract_strided_slice %7 {offsets = [0, 0], sizes = [16, 128], strides = [1, 1]} : vector<16x160xf32> to vector<16x128xf32>
    %c0_6 = arith.constant 0 : index
    %c0_7 = arith.constant 0 : index
    %9 = vector.load %arg4[%c0_6, %c0_7] : memref<16x128xf32, #tpu.memory_space<vmem>>, vector<16x128xf32>
    tpu.vector_store %arg4[%c0_6, %c0_7], %8 {strides = array<i32>} : memref<16x128xf32, #tpu.memory_space<vmem>>, vector<16x128xf32>,
    %10 = vector.extract_strided_slice %7 {offsets = [0, 128], sizes = [16, 32], strides = [1, 1]} : vector<16x160xf32> to vector<16x32xf32>
    %c0_8 = arith.constant 0 : index
    %c0_9 = arith.constant 0 : index
    %11 = vector.load %arg5[%c0_8, %c0_9] : memref<16x32xf32, #tpu.memory_space<vmem>>, vector<16x32xf32>
    tpu.vector_store %arg5[%c0_8, %c0_9], %10 {strides = array<i32>} : memref<16x32xf32, #tpu.memory_space<vmem>>, vector<16x32xf32>,
    return
  }
  func.func @transform_0(%arg0: i32) -> (i32, i32) {
    %c0_i32 = arith.constant 0 : i32
    %c0_i32_0 = arith.constant 0 : i32
    return %arg0, %c0_i32 : i32, i32
  }
  func.func @transform_1(%arg0: i32) -> (i32, i32) {
    %c0_i32 = arith.constant 0 : i32
    %c0_i32_0 = arith.constant 0 : i32
    %c0_i32_1 = arith.constant 0 : i32
    return %c0_i32, %c0_i32_0 : i32, i32
  }
  func.func @transform_2(%arg0: i32) -> (i32, i32) {
    %c0_i32 = arith.constant 0 : i32
    %c0_i32_0 = arith.constant 0 : i32
    %c0_i32_1 = arith.constant 0 : i32
    return %c0_i32, %c0_i32_0 : i32, i32
  }
  func.func @transform_3(%arg0: i32) -> (i32, i32) {
    %c0_i32 = arith.constant 0 : i32
    %c0_i32_0 = arith.constant 0 : i32
    return %arg0, %c0_i32 : i32, i32
  }
  func.func @transform_4(%arg0: i32) -> (i32, i32) {
    %c0_i32 = arith.constant 0 : i32
    %c0_i32_0 = arith.constant 0 : i32
    return %arg0, %c0_i32 : i32, i32
  }
}

</mosaic_0001>

<bundles_post_ra>
// kernel: tile.13
= control target key start
LH: loop header
LB: loop body
LE: loop exit
PB: predicated region body
PF: predicated region fallthrough
CT: control target
= control target key end

     0   :  { %s40_s0 = inlined_call_operand.vmem [shape: f32[4], index: 0, kind: input, shape index: {}]   ;;  %s41_s1 = inlined_call_operand.vmem [shape: f32[32,4], index: 1, kind: output, shape index: {}]  }
   0x1   :  { %v4_v0 = vld [vmem:[%s40_s0] ss:$0 sm:$0xff] }
   0x2   :  { %5 = vst [vmem:[%s41_s1] sm:$0xff] %v4_v0 }
   0x3   :  { %12 = vst [vmem:[%s41_s1 + $0x8] sm:$0xff] %v4_v0 }
   0x4   :  { %13 = vst [vmem:[%s41_s1 + $0x10] sm:$0xff] %v4_v0 }
   0x5   :  { %14 = vst [vmem:[%s41_s1 + $0x18] sm:$0xff] %v4_v0 }

// kernel: tile.14
= control target key start
LH: loop header
LB: loop body
LE: loop exit
PB: predicated region body
PF: predicated region fallthrough
CT: control target
= control target key end

     0   :  { %s259_s10 = smov 124   ;;  %s260_s11 = smov 116   ;;  %vm3_vm0 = vcmask 31744   ;;  %vm9_vm1 = vcmask 1048544   ;;  %vm15_vm2 = vcmask 1015744   ;;  %vm21_vm3 = vcmask 982944   ;;  %s399_s0 = inlined_call_operand.vmem [shape: f32[32,4], index: 0, kind: input, shape index: {}]   ;;  %s400_s1 = inlined_call_operand.vmem [shape: f32[128], index: 1, kind: output, shape index: {}]  }
   0x1   :  { %v197_v0 = vld [vmem:[%s399_s0 + $0x1f] sm:$0x1]   ;;  %v199_v1 = vld [vmem:[%s399_s0 + $0x1d] sm:$0x1]   ;;  %v201_v2 = vld [vmem:[%s399_s0 + $0x1b] sm:$0x1]  }
   0x2   :  { %7 = vrot.lane.b32.xlu0 %v197_v0, %s259_s10  ;;  %19 = vrot.lane.b32.xlu1 %v199_v1, %s260_s11  ;;  %s261_s14 = smov 108   ;;  %v198_v3 = vld [vmem:[%s399_s0 + $0x1e] sm:$0x1]   ;;  %v200_v4 = vld [vmem:[%s399_s0 + $0x1c] sm:$0x1]   ;;  %s262_s19 = smov 120  }
   0x3   :  { %31 = vrot.lane.b32.xlu2 %v201_v2, %s261_s14  ;;  %s263_s20 = smov 112   ;;  %v202_v5 = vld [vmem:[%s399_s0 + $0x1a] sm:$0x1]   ;;  %s264_s23 = smov 104   ;;  %v203_v6 = vld [vmem:[%s399_s0 + $0x19] sm:$0x1]  }
   0x4   :  { %v204_v7 = vld [vmem:[%s399_s0 + $0x18] sm:$0x1]   ;;  %s265_s28 = smov 100   ;;  %s266_s29 = smov 96   ;;  %v205_v8 = vld [vmem:[%s399_s0 + $0x17] sm:$0x1]  }
   0x5   :  { %s267_s3 = smov 92   ;;  %v206_v9 = vld [vmem:[%s399_s0 + $0x16] sm:$0x1]   ;;  %v207_v10 = vld [vmem:[%s399_s0 + $0x15] sm:$0x1]   ;;  %s268_s8 = smov 88  }
   0x6   :  { %s269_s9 = smov 84   ;;  %v208_v11 = vld [vmem:[%s399_s0 + $0x14] sm:$0x1]   ;;  %s270_s12 = smov 80   ;;  %v209_v12 = vld [vmem:[%s399_s0 + $0x13] sm:$0x1]  }
   0x7   :  { %v210_v13 = vld [vmem:[%s399_s0 + $0x12] sm:$0x1]   ;;  %s271_s17 = smov 76   ;;  %s272_s18 = smov 72   ;;  %v211_v14 = vld [vmem:[%s399_s0 + $0x11] sm:$0x1]  }
   0x8   :  { %s273_s21 = smov 68   ;;  %v212_v15 = vld [vmem:[%s399_s0 + $0x10] sm:$0x1]   ;;  %v213_v16 = vld [vmem:[%s399_s0 + $0xf] sm:$0x1]   ;;  %s274_s26 = smov 64  }
   0x9   :  { %s275_s27 = smov 60   ;;  %v214_v17 = vld [vmem:[%s399_s0 + $0xe] sm:$0x1]   ;;  %s276_s30 = smov 56   ;;  %v215_v18 = vld [vmem:[%s399_s0 + $0xd] sm:$0x1]  }
   0xa   :  { %13 = vrot.lane.b32.xlu0 %v198_v3, %s262_s19  ;;  %25 = vrot.lane.b32.xlu1 %v200_v4, %s263_s20  ;;  %v216_v19 = vld [vmem:[%s399_s0 + $0xc] sm:$0x1]   ;;  %s277_s6 = smov 52   ;;  %s278_s7 = smov 48   ;;  %v217_v20 = vld [vmem:[%s399_s0 + $0xb] sm:$0x1]  }
   0xb   :  { %37 = vrot.lane.b32.xlu2 %v202_v5, %s264_s23  ;;  %s279_s10 = smov 44   ;;  %v218_v21 = vld [vmem:[%s399_s0 + $0xa] sm:$0x1]   ;;  %v219_v22 = vld [vmem:[%s399_s0 + $0x9] sm:$0x1]   ;;  %s280_s15 = smov 40  }
   0xc   :  { %s281_s16 = smov 36   ;;  %v220_v23 = vld [vmem:[%s399_s0 + $0x8] sm:$0x1]   ;;  %s282_s19 = smov 32   ;;  %v221_v24 = vld [vmem:[%s399_s0 + $0x7] sm:$0x1]  }
   0xd   :  { %v222_v25 = vld [vmem:[%s399_s0 + $0x6] sm:$0x1]   ;;  %s283_s24 = smov 28   ;;  %s284_s25 = smov 24   ;;  %v223_v26 = vld [vmem:[%s399_s0 + $0x5] sm:$0x1]  }
   0xe   :  { %v224_v27 = vld [vmem:[%s399_s0 + $0x4] sm:$0x1]   ;;  %v225_v28 = vld [vmem:[%s399_s0 + $0x3] sm:$0x1]   ;;  %s286_s4 = smov 16   ;;  %s287_s5 = smov 12  }
   0xf   :  { %v226_v29 = vld [vmem:[%s399_s0 + $0x2] sm:$0x1]   ;;  %v227_v30 = vld [vmem:[%s399_s0 + $0x1] sm:$0x1]   ;;  %s289_s11 = smov 4   ;;  %vm27_vm4 = vcmask 950144  }
  0x10   :  { %v2_v31 = vld [vmem:[%s399_s0] sm:$0x1]   ;;  %vm33_vm5 = vcmask 917344   ;;  %vm39_vm6 = vcmask 884544   ;;  %vm45_vm7 = vcmask 851744   ;;  %vm51_vm8 = vcmask 818944  }
  0x11   :  { %4 = vst.msk [vmem:[#allocation0] sm:$0x1] %vm3_vm0, %v2_v31   ;;  %vm57_vm9 = vcmask 786144   ;;  %vm63_vm10 = vcmask 753344   ;;  %vm69_vm11 = vcmask 720544   ;;  %vm75_vm12 = vcmask 687744  }
  0x12   :  { %43 = vrot.lane.b32.xlu0 %v203_v6, %s265_s28  ;;  %49 = vrot.lane.b32.xlu1 %v204_v7, %s266_s29  ;;  %s285_s28 = smov 20   ;;  %vm81_vm13 = vcmask 654944   ;;  %vm87_vm14 = vcmask 622144   ;;  %vm93_vm15 = vcmask 589344   ;;  %vm99_vm0 = vcmask 556544  }
  0x13   :  { %55 = vrot.lane.b32.xlu2 %v205_v8, %s267_s3 }
  0x1a   :  { %61 = vrot.lane.b32.xlu0 %v206_v9, %s268_s8  ;;  %67 = vrot.lane.b32.xlu1 %v207_v10, %s269_s9  ;;  %s288_s8 = smov 8  }
  0x1b   :  { %73 = vrot.lane.b32.xlu2 %v208_v11, %s270_s12 }
  0x22   :  { %79 = vrot.lane.b32.xlu0 %v209_v12, %s271_s17  ;;  %85 = vrot.lane.b32.xlu1 %v210_v13, %s272_s18 }
  0x23   :  { %91 = vrot.lane.b32.xlu2 %v211_v14, %s273_s21 }
  0x2a   :  { %97 = vrot.lane.b32.xlu0 %v212_v15, %s274_s26  ;;  %103 = vrot.lane.b32.xlu1 %v213_v16, %s275_s27 }
  0x2b   :  { %109 = vrot.lane.b32.xlu2 %v214_v17, %s276_s30 }
  0x32   :  { %115 = vrot.lane.b32.xlu0 %v215_v18, %s277_s6  ;;  %121 = vrot.lane.b32.xlu1 %v216_v19, %s278_s7 }
  0x33   :  { %127 = vrot.lane.b32.xlu2 %v217_v20, %s279_s10 }
  0x3a   :  { %133 = vrot.lane.b32.xlu0 %v218_v21, %s280_s15  ;;  %139 = vrot.lane.b32.xlu1 %v219_v22, %s281_s16 }
  0x3b   :  { %145 = vrot.lane.b32.xlu2 %v220_v23, %s282_s19 }
  0x42   :  { %151 = vrot.lane.b32.xlu0 %v221_v24, %s283_s24  ;;  %157 = vrot.lane.b32.xlu1 %v222_v25, %s284_s25 }
  0x43   :  { %163 = vrot.lane.b32.xlu2 %v223_v26, %s285_s28 }
  0x4a   :  { %169 = vrot.lane.b32.xlu0 %v224_v27, %s286_s4  ;;  %175 = vrot.lane.b32.xlu1 %v225_v28, %s287_s5 }
  0x4b   :  { %181 = vrot.lane.b32.xlu2 %v226_v29, %s288_s8 }
  0x52   :  { %187 = vrot.lane.b32.xlu0 %v227_v30, %s289_s11 }
  0x5d   :  { %v32_v32 = vpop.permute.xlu2 %31  }
  0x65   :  { %v38_v33 = vpop.permute.xlu2 %37  }
  0x6d   :  { %v56_v34 = vpop.permute.xlu2 %55  }
  0x74   :  { %v8_v35 = vpop.permute.xlu0 %7   ;;  %v20_v36 = vpop.permute.xlu1 %19  }
  0x75   :  { %10 = vst.msk [vmem:[#allocation0] sm:$0x1] %vm9_vm1, %v8_v35   ;;  %v74_v37 = vpop.permute.xlu2 %73   ;;  %vm105_vm1 = vcmask 523744  }
  0x7c   :  { %v14_v38 = vpop.permute.xlu0 %13   ;;  %v26_v39 = vpop.permute.xlu1 %25  }
  0x7d   :  { %16 = vst.msk [vmem:[#allocation0] sm:$0x1] %vm15_vm2, %v14_v38   ;;  %v92_v40 = vpop.permute.xlu2 %91   ;;  %vm111_vm2 = vcmask 490944  }
  0x7e   :  { %22 = vst.msk [vmem:[#allocation0] sm:$0x1] %vm21_vm3, %v20_v36   ;;  %vm117_vm3 = vcmask 458144  }
  0x7f   :  { %28 = vst.msk [vmem:[#allocation0] sm:$0x1] %vm27_vm4, %v26_v39   ;;  %vm123_vm4 = vcmask 425344  }
  0x80   :  { %34 = vst.msk [vmem:[#allocation0] sm:$0x1] %vm33_vm5, %v32_v32   ;;  %vm129_vm5 = vcmask 392544  }
  0x81   :  { %40 = vst.msk [vmem:[#allocation0] sm:$0x1] %vm39_vm6, %v38_v33   ;;  %vm135_vm6 = vcmask 359744  }
  0x84   :  { %v44_v41 = vpop.permute.xlu0 %43   ;;  %v50_v42 = vpop.permute.xlu1 %49  }
  0x85   :  { %46 = vst.msk [vmem:[#allocation0] sm:$0x1] %vm45_vm7, %v44_v41   ;;  %v110_v43 = vpop.permute.xlu2 %109   ;;  %vm141_vm7 = vcmask 326944  }
  0x86   :  { %52 = vst.msk [vmem:[#allocation0] sm:$0x1] %vm51_vm8, %v50_v42   ;;  %vm147_vm8 = vcmask 294144  }
  0x87   :  { %58 = vst.msk [vmem:[#allocation0] sm:$0x1] %vm57_vm9, %v56_v34   ;;  %vm153_vm9 = vcmask 261344  }
  0x8c   :  { %v62_v44 = vpop.permute.xlu0 %61   ;;  %v68_v45 = vpop.permute.xlu1 %67  }
  0x8d   :  { %64 = vst.msk [vmem:[#allocation0] sm:$0x1] %vm63_vm10, %v62_v44   ;;  %v128_v46 = vpop.permute.xlu2 %127   ;;  %vm159_vm10 = vcmask 228544  }
  0x8e   :  { %70 = vst.msk [vmem:[#allocation0] sm:$0x1] %vm69_vm11, %v68_v45   ;;  %vm165_vm11 = vcmask 195744  }
  0x8f   :  { %76 = vst.msk [vmem:[#allocation0] sm:$0x1] %vm75_vm12, %v74_v37   ;;  %vm171_vm12 = vcmask 162944  }
  0x94   :  { %v80_v47 = vpop.permute.xlu0 %79   ;;  %v86_v48 = vpop.permute.xlu1 %85  }
  0x95   :  { %82 = vst.msk [vmem:[#allocation0] sm:$0x1] %vm81_vm13, %v80_v47   ;;  %v146_v49 = vpop.permute.xlu2 %145   ;;  %vm177_vm13 = vcmask 130144  }
  0x96   :  { %88 = vst.msk [vmem:[#allocation0] sm:$0x1] %vm87_vm14, %v86_v48   ;;  %vm183_vm14 = vcmask 97344  }
  0x97   :  { %94 = vst.msk [vmem:[#allocation0] sm:$0x1] %vm93_vm15, %v92_v40   ;;  %vm189_vm15 = vcmask 64544  }
  0x9c   :  { %v98_v50 = vpop.permute.xlu0 %97   ;;  %v104_v51 = vpop.permute.xlu1 %103  }
  0x9d   :  { %100 = vst.msk [vmem:[#allocation0] sm:$0x1] %vm99_vm0, %v98_v50   ;;  %v164_v52 = vpop.permute.xlu2 %163  }
  0x9e   :  { %106 = vst.msk [vmem:[#allocation0] sm:$0x1] %vm105_vm1, %v104_v51  }
  0x9f   :  { %112 = vst.msk [vmem:[#allocation0] sm:$0x1] %vm111_vm2, %v110_v43  }
  0xa4   :  { %v116_v53 = vpop.permute.xlu0 %115   ;;  %v122_v54 = vpop.permute.xlu1 %121  }
  0xa5   :  { %118 = vst.msk [vmem:[#allocation0] sm:$0x1] %vm117_vm3, %v116_v53   ;;  %v182_v55 = vpop.permute.xlu2 %181  }
  0xa6   :  { %124 = vst.msk [vmem:[#allocation0] sm:$0x1] %vm123_vm4, %v122_v54  }
  0xa7   :  { %130 = vst.msk [vmem:[#allocation0] sm:$0x1] %vm129_vm5, %v128_v46  }
  0xac   :  { %v134_v56 = vpop.permute.xlu0 %133   ;;  %v140_v57 = vpop.permute.xlu1 %139  }
  0xad   :  { %136 = vst.msk [vmem:[#allocation0] sm:$0x1] %vm135_vm6, %v134_v56  }
  0xae   :  { %142 = vst.msk [vmem:[#allocation0] sm:$0x1] %vm141_vm7, %v140_v57  }
  0xaf   :  { %148 = vst.msk [vmem:[#allocation0] sm:$0x1] %vm147_vm8, %v146_v49  }
  0xb4   :  { %v152_v58 = vpop.permute.xlu0 %151   ;;  %v158_v59 = vpop.permute.xlu1 %157  }
  0xb5   :  { %154 = vst.msk [vmem:[#allocation0] sm:$0x1] %vm153_vm9, %v152_v58  }
  0xb6   :  { %160 = vst.msk [vmem:[#allocation0] sm:$0x1] %vm159_vm10, %v158_v59  }
  0xb7   :  { %166 = vst.msk [vmem:[#allocation0] sm:$0x1] %vm165_vm11, %v164_v52  }
  0xbc   :  { %v170_v60 = vpop.permute.xlu0 %169   ;;  %v176_v61 = vpop.permute.xlu1 %175  }
  0xbd   :  { %172 = vst.msk [vmem:[#allocation0] sm:$0x1] %vm171_vm12, %v170_v60  }
  0xbe   :  { %178 = vst.msk [vmem:[#allocation0] sm:$0x1] %vm177_vm13, %v176_v61  }
  0xbf   :  { %184 = vst.msk [vmem:[#allocation0] sm:$0x1] %vm183_vm14, %v182_v55  }
  0xc4   :  { %v188_v62 = vpop.permute.xlu0 %187  }
  0xc5   :  { %190 = vst.msk [vmem:[#allocation0] sm:$0x1] %vm189_vm15, %v188_v62  }
  0xcc   :  { %v193_v63 = vld [vmem:[#allocation0] sm:$0x1] }
  0xcd   :  { %196 = vst [vmem:[%s400_s1] sm:$0x1] %v193_v63 }

// kernel: tile.18
= control target key start
LH: loop header
LB: loop body
LE: loop exit
PB: predicated region body
PF: predicated region fallthrough
CT: control target
= control target key end

     0   :  { %s22_s0 = inlined_call_operand.vmem [shape: f32[4], index: 0, kind: input, shape index: {}]   ;;  %s23_s1 = inlined_call_operand.vmem [shape: f32[8,4], index: 1, kind: output, shape index: {}]  }
   0x1   :  { %v4_v0 = vld [vmem:[%s22_s0] ss:$0 sm:$0xff] }
   0x2   :  { %5 = vst [vmem:[%s23_s1] sm:$0xff] %v4_v0 }

// kernel: tile.19
= control target key start
LH: loop header
LB: loop body
LE: loop exit
PB: predicated region body
PF: predicated region fallthrough
CT: control target
= control target key end

     0   :  { %s67_s10 = smov 28   ;;  %s68_s11 = smov 20   ;;  %vm3_vm0 = vcmask 31744   ;;  %vm9_vm1 = vcmask 261344   ;;  %vm15_vm2 = vcmask 228544   ;;  %vm21_vm3 = vcmask 195744   ;;  %s111_s0 = inlined_call_operand.vmem [shape: f32[8,4], index: 0, kind: input, shape index: {}]   ;;  %s112_s1 = inlined_call_operand.vmem [shape: f32[32], index: 1, kind: output, shape index: {}]  }
   0x1   :  { %v53_v0 = vld [vmem:[%s111_s0 + $0x7] sm:$0x1]   ;;  %v55_v1 = vld [vmem:[%s111_s0 + $0x5] sm:$0x1]   ;;  %v57_v2 = vld [vmem:[%s111_s0 + $0x3] sm:$0x1]  }
   0x2   :  { %7 = vrot.lane.b32.xlu0 %v53_v0, %s67_s10  ;;  %19 = vrot.lane.b32.xlu1 %v55_v1, %s68_s11  ;;  %s69_s14 = smov 12   ;;  %v54_v3 = vld [vmem:[%s111_s0 + $0x6] sm:$0x1]   ;;  %v56_v4 = vld [vmem:[%s111_s0 + $0x4] sm:$0x1]   ;;  %s70_s21 = smov 24  }
   0x3   :  { %31 = vrot.lane.b32.xlu2 %v57_v2, %s69_s14  ;;  %v58_v5 = vld [vmem:[%s111_s0 + $0x2] sm:$0x1]   ;;  %s71_s22 = smov 16   ;;  %s72_s23 = smov 8   ;;  %v59_v6 = vld [vmem:[%s111_s0 + $0x1] sm:$0x1]  }
   0x4   :  { %s73_s26 = smov 4   ;;  %v2_v7 = vld [vmem:[%s111_s0] sm:$0x1]   ;;  %vm27_vm4 = vcmask 162944   ;;  %vm33_vm5 = vcmask 130144   ;;  %vm39_vm6 = vcmask 97344  }
   0x5   :  { %4 = vst.msk [vmem:[#allocation0] sm:$0x1] %vm3_vm0, %v2_v7   ;;  %vm45_vm7 = vcmask 64544  }
   0xa   :  { %13 = vrot.lane.b32.xlu0 %v54_v3, %s70_s21  ;;  %25 = vrot.lane.b32.xlu1 %v56_v4, %s71_s22 }
   0xb   :  { %37 = vrot.lane.b32.xlu2 %v58_v5, %s72_s23 }
  0x12   :  { %43 = vrot.lane.b32.xlu0 %v59_v6, %s73_s26 }
  0x5d   :  { %v32_v8 = vpop.permute.xlu2 %31  }
  0x65   :  { %v38_v9 = vpop.permute.xlu2 %37  }
  0x74   :  { %v8_v10 = vpop.permute.xlu0 %7   ;;  %v20_v11 = vpop.permute.xlu1 %19  }
  0x75   :  { %10 = vst.msk [vmem:[#allocation0] sm:$0x1] %vm9_vm1, %v8_v10  }
  0x7c   :  { %v14_v12 = vpop.permute.xlu0 %13   ;;  %v26_v13 = vpop.permute.xlu1 %25  }
  0x7d   :  { %16 = vst.msk [vmem:[#allocation0] sm:$0x1] %vm15_vm2, %v14_v12  }
  0x7e   :  { %22 = vst.msk [vmem:[#allocation0] sm:$0x1] %vm21_vm3, %v20_v11  }
  0x7f   :  { %28 = vst.msk [vmem:[#allocation0] sm:$0x1] %vm27_vm4, %v26_v13  }
  0x80   :  { %34 = vst.msk [vmem:[#allocation0] sm:$0x1] %vm33_vm5, %v32_v8  }
  0x81   :  { %40 = vst.msk [vmem:[#allocation0] sm:$0x1] %vm39_vm6, %v38_v9  }
  0x84   :  { %v44_v14 = vpop.permute.xlu0 %43  }
  0x85   :  { %46 = vst.msk [vmem:[#allocation0] sm:$0x1] %vm45_vm7, %v44_v14  }
  0x8c   :  { %v49_v15 = vld [vmem:[#allocation0] sm:$0x1] }
  0x8d   :  { %52 = vst [vmem:[%s112_s1] sm:$0x1] %v49_v15 }

// kernel: oct_conv_mid_block.1
= control target key start
LH: loop header
LB: loop body
LE: loop exit
PB: predicated region body
PF: predicated region fallthrough
CT: control target
= control target key end

     0   :  { %vm116_vm0 = vcmask 785408   ;;  %vm267_vm1 = vcmask 261120   ;;  %s628_s1 = inlined_call_operand.vmem [shape: f32[352,160], index: 1, kind: input, shape index: {}]   ;;  %s629_s0 = inlined_call_operand.vmem [shape: f32[16,352], index: 0, kind: input, shape index: {}]   ;;  %s630_s2 = inlined_call_operand.vmem [shape: f32[1,160], index: 2, kind: input, shape index: {}]   ;;  %s631_s3 = inlined_call_operand.vmem [shape: f32[16,128], index: 3, kind: output, shape index: {0}]   ;;  %s632_s4 = inlined_call_operand.vmem [shape: f32[16,32], index: 4, kind: output, shape index: {1}]  }
   0x1   :  { %v108_v0 = vld [vmem:[%s628_s1 + $0x2b0] sm:$0xff]  ;;  %v106_v1 = vld [vmem:[%s628_s1 + $0x2a0] sm:$0xff]  ;;  %v53_v16 = vld [vmem:[%s628_s1 + $0xf8] sm:$0xff] }
   0x2   :  { %173 = vmatpush.msra.mxu2 %v108_v0  ;;  %v52_v2 = vld [vmem:[%s628_s1 + $0xf0] sm:$0xff]  ;;  %v50_v4 = vld [vmem:[%s628_s1 + $0xe0] sm:$0xff]  ;;  %v51_v18 = vld [vmem:[%s628_s1 + $0xe8] sm:$0xff]  ;;  %192 = vmatpush.msra.mxu3 %v53_v16 }
   0x3   :  { %v104_v3 = vld [vmem:[%s628_s1 + $0x290] sm:$0xff]  ;;  %123 = vmatpush.msra.mxu0 %v52_v2  ;;  %v82_v7 = vld [vmem:[%s628_s1 + $0x1e0] sm:$0xff]  ;;  %v49_v22 = vld [vmem:[%s628_s1 + $0xd8] sm:$0xff] }
   0x4   :  { %v84_v5 = vld [vmem:[%s628_s1 + $0x1f0] sm:$0xff]  ;;  %174 = vmatpush.msra.mxu2 %v106_v1  ;;  %v102_v8 = vld [vmem:[%s628_s1 + $0x280] sm:$0xff]  ;;  %193 = vmatpush.msra.mxu3 %v51_v18  ;;  %v47_v26 = vld [vmem:[%s628_s1 + $0xc8] sm:$0xff] }
   0x5   :  { %146 = vmatpush.msra.mxu1 %v84_v5  ;;  %v48_v6 = vld [vmem:[%s628_s1 + $0xd0] sm:$0xff]  ;;  %124 = vmatpush.msra.mxu0 %v50_v4  ;;  %v46_v10 = vld [vmem:[%s628_s1 + $0xc0] sm:$0xff]  ;;  %v45_v30 = vld [vmem:[%s628_s1 + $0xb8] sm:$0xff] }
   0x6   :  { %v80_v9 = vld [vmem:[%s628_s1 + $0x1d0] sm:$0xff]  ;;  %175 = vmatpush.msra.mxu2 %v104_v3  ;;  %v78_v12 = vld [vmem:[%s628_s1 + $0x1c0] sm:$0xff]  ;;  %194 = vmatpush.msra.mxu3 %v49_v22  ;;  %v43_v34 = vld [vmem:[%s628_s1 + $0xa8] sm:$0xff] }
   0x7   :  { %147 = vmatpush.msra.mxu1 %v82_v7  ;;  %v100_v11 = vld [vmem:[%s628_s1 + $0x270] sm:$0xff]  ;;  %125 = vmatpush.msra.mxu0 %v48_v6  ;;  %v98_v14 = vld [vmem:[%s628_s1 + $0x260] sm:$0xff]  ;;  %v41_v38 = vld [vmem:[%s628_s1 + $0x98] sm:$0xff] }
   0x8   :  { %176 = vmatpush.msra.mxu2 %v102_v8  ;;  %v44_v13 = vld [vmem:[%s628_s1 + $0xb0] sm:$0xff]  ;;  %v42_v17 = vld [vmem:[%s628_s1 + $0xa0] sm:$0xff]  ;;  %195 = vmatpush.msra.mxu3 %v47_v26  ;;  %v85_v41 = vld [vmem:[%s628_s1 + $0x1f8] sm:$0xff] }
   0x9   :  { %148 = vmatpush.msra.mxu1 %v80_v9  ;;  %126 = vmatpush.msra.mxu0 %v46_v10  ;;  %v76_v15 = vld [vmem:[%s628_s1 + $0x1b0] sm:$0xff]  ;;  %v74_v20 = vld [vmem:[%s628_s1 + $0x1a0] sm:$0xff]  ;;  %v39_v44 = vld [vmem:[%s628_s1 + $0x88] sm:$0xff] }
   0xa   :  { %177 = vmatpush.msra.mxu2 %v100_v11  ;;  %v96_v19 = vld [vmem:[%s628_s1 + $0x250] sm:$0xff]  ;;  %v94_v23 = vld [vmem:[%s628_s1 + $0x240] sm:$0xff]  ;;  %196 = vmatpush.msra.mxu3 %v45_v30  ;;  %v83_v45 = vld [vmem:[%s628_s1 + $0x1e8] sm:$0xff] }
   0xb   :  { %149 = vmatpush.msra.mxu1 %v78_v12  ;;  %127 = vmatpush.msra.mxu0 %v44_v13  ;;  %v40_v21 = vld [vmem:[%s628_s1 + $0x90] sm:$0xff]  ;;  %v38_v25 = vld [vmem:[%s628_s1 + $0x80] sm:$0xff]  ;;  %v37_v48 = vld [vmem:[%s628_s1 + $0x78] sm:$0xff] }
   0xc   :  { %178 = vmatpush.msra.mxu2 %v98_v14  ;;  %v72_v24 = vld [vmem:[%s628_s1 + $0x190] sm:$0xff]  ;;  %v70_v28 = vld [vmem:[%s628_s1 + $0x180] sm:$0xff]  ;;  %197 = vmatpush.msra.mxu3 %v43_v34  ;;  %v81_v49 = vld [vmem:[%s628_s1 + $0x1d8] sm:$0xff] }
   0xd   :  { %150 = vmatpush.msra.mxu1 %v76_v15  ;;  %128 = vmatpush.msra.mxu0 %v42_v17  ;;  %v92_v27 = vld [vmem:[%s628_s1 + $0x230] sm:$0xff]  ;;  %v90_v31 = vld [vmem:[%s628_s1 + $0x220] sm:$0xff]  ;;  %v79_v53 = vld [vmem:[%s628_s1 + $0x1c8] sm:$0xff] }
   0xe   :  { %179 = vmatpush.msra.mxu2 %v96_v19  ;;  %v36_v29 = vld [vmem:[%s628_s1 + $0x70] sm:$0xff]  ;;  %v34_v33 = vld [vmem:[%s628_s1 + $0x60] sm:$0xff]  ;;  %198 = vmatpush.msra.mxu3 %v41_v38  ;;  %v35_v56 = vld [vmem:[%s628_s1 + $0x68] sm:$0xff] }
   0xf   :  { %151 = vmatpush.msra.mxu1 %v74_v20  ;;  %129 = vmatpush.msra.mxu0 %v40_v21  ;;  %v68_v32 = vld [vmem:[%s628_s1 + $0x170] sm:$0xff]  ;;  %v66_v36 = vld [vmem:[%s628_s1 + $0x160] sm:$0xff]  ;;  %v77_v57 = vld [vmem:[%s628_s1 + $0x1b8] sm:$0xff] }
  0x10   :  { %180 = vmatpush.msra.mxu2 %v94_v23  ;;  %v88_v35 = vld [vmem:[%s628_s1 + $0x210] sm:$0xff]  ;;  %v86_v39 = vld [vmem:[%s628_s1 + $0x200] sm:$0xff]  ;;  %199 = vmatpush.msra.mxu3 %v39_v44  ;;  %v109_v59 = vld [vmem:[%s628_s1 + $0x2b8] sm:$0xff] }
  0x11   :  { %152 = vmatpush.msra.mxu1 %v72_v24  ;;  %130 = vmatpush.msra.mxu0 %v38_v25  ;;  %v32_v37 = vld [vmem:[%s628_s1 + $0x50] sm:$0xff]  ;;  %v30_v42 = vld [vmem:[%s628_s1 + $0x40] sm:$0xff]  ;;  %v75_v61 = vld [vmem:[%s628_s1 + $0x1a8] sm:$0xff] }
  0x12   :  { %181 = vmatpush.msra.mxu2 %v92_v27  ;;  %v64_v40 = vld [vmem:[%s628_s1 + $0x150] sm:$0xff]  ;;  %v62_v43 = vld [vmem:[%s628_s1 + $0x140] sm:$0xff]  ;;  %200 = vmatpush.msra.mxu3 %v37_v48  ;;  %v33_v63 = vld [vmem:[%s628_s1 + $0x58] sm:$0xff] }
  0x13   :  { %153 = vmatpush.msra.mxu1 %v70_v28  ;;  %131 = vmatpush.msra.mxu0 %v36_v29  ;;  %v28_v46 = vld [vmem:[%s628_s1 + $0x30] sm:$0xff]  ;;  %v26_v50 = vld [vmem:[%s628_s1 + $0x20] sm:$0xff]  ;;  %v107_v0 = vld [vmem:[%s628_s1 + $0x2a8] sm:$0xff] }
  0x14   :  { %182 = vmatpush.msra.mxu2 %v90_v31  ;;  %v60_v47 = vld [vmem:[%s628_s1 + $0x130] sm:$0xff]  ;;  %v58_v51 = vld [vmem:[%s628_s1 + $0x120] sm:$0xff]  ;;  %201 = vmatpush.msra.mxu3 %v35_v56  ;;  %v73_v1 = vld [vmem:[%s628_s1 + $0x198] sm:$0xff] }
  0x15   :  { %154 = vmatpush.msra.mxu1 %v68_v32  ;;  %132 = vmatpush.msra.mxu0 %v34_v33  ;;  %v478_v52 = vld [vmem:[%s629_s0 + $0x10] sm:$0xff]  ;;  %v22_v58 = vld [vmem:[%s628_s1] sm:$0xff]  ;;  %v524_v2 = vld [vmem:[%s629_s0 + $0x8] sm:$0xff] }
  0x16   :  { %183 = vmatpush.msra.mxu2 %v88_v35  ;;  %v24_v54 = vld [vmem:[%s628_s1 + $0x10] sm:$0xff]  ;;  %v54_v60 = vld [vmem:[%s628_s1 + $0x100] sm:$0xff]  ;;  %v31_v3 = vld [vmem:[%s628_s1 + $0x48] sm:$0xff]  ;;  %202 = vmatpush.msra.mxu3 %v33_v63 }
  0x17   :  { %155 = vmatpush.msra.mxu1 %v66_v36  ;;  %133 = vmatpush.msra.mxu0 %v32_v37  ;;  %v56_v55 = vld [vmem:[%s628_s1 + $0x110] sm:$0xff]  ;;  %v16_v62 = vld [vmem:[%s629_s0] sm:$0xff]  ;;  %v105_v4 = vld [vmem:[%s628_s1 + $0x298] sm:$0xff] }
  0x18   :  { %184 = vmatpush.msra.mxu2 %v86_v39  ;;  %v71_v5 = vld [vmem:[%s628_s1 + $0x188] sm:$0xff]  ;;  %v29_v6 = vld [vmem:[%s628_s1 + $0x38] sm:$0xff]  ;;  %203 = vmatpush.msra.mxu3 %v31_v3  ;;  %v20_v17 = vld [vmem:[%s629_s0 + $0x20] sm:$0xff] }
  0x19   :  { %156 = vmatpush.msra.mxu1 %v64_v40  ;;  %134 = vmatpush.msra.mxu0 %v30_v42  ;;  %v103_v7 = vld [vmem:[%s628_s1 + $0x288] sm:$0xff]  ;;  %v69_v8 = vld [vmem:[%s628_s1 + $0x178] sm:$0xff]  ;;  %v110_v30 = vld [vmem:[%s630_s2] sm:$0x3] }
  0x1a   :  { %215 = vmatpush.msrb.mxu2 %v85_v41  ;;  %v21_v9 = vld [vmem:[%s629_s0 + $0x28] sm:$0xff]  ;;  %204 = vmatpush.msra.mxu3 %v29_v6  ;;  %v101_v12 = vld [vmem:[%s628_s1 + $0x278] sm:$0xff]  ;;  %v112_v31 = vperm.slane %v110_v30, 0 }
  0x1b   :  { %157 = vmatpush.msra.mxu1 %v62_v43  ;;  %135 = vmatpush.msra.mxu0 %v28_v46  ;;  %v27_v10 = vld [vmem:[%s628_s1 + $0x28] sm:$0xff]  ;;  %v19_v13 = vld [vmem:[%s629_s0 + $0x18] sm:$0xff] }
  0x1c   :  { %216 = vmatpush.msrb.mxu2 %v83_v45  ;;  %v67_v11 = vld [vmem:[%s628_s1 + $0x168] sm:$0xff]  ;;  %v25_v14 = vld [vmem:[%s628_s1 + $0x18] sm:$0xff]  ;;  %205 = vmatpush.msra.mxu3 %v27_v10 }
  0x1d   :  { %158 = vmatpush.msra.mxu1 %v60_v47  ;;  %136 = vmatpush.msra.mxu0 %v26_v50  ;;  %v65_v15 = vld [vmem:[%s628_s1 + $0x158] sm:$0xff]  ;;  %v99_v16 = vld [vmem:[%s628_s1 + $0x268] sm:$0xff]  ;;  %v113_v47 = vperm.slane %v110_v30, 1 }
  0x1e   :  { %217 = vmatpush.msrb.mxu2 %v81_v49  ;;  %v23_v18 = vld [vmem:[%s628_s1 + $0x8] sm:$0xff]  ;;  %206 = vmatpush.msra.mxu3 %v25_v14  ;;  %v97_v20 = vld [vmem:[%s628_s1 + $0x258] sm:$0xff] }
  0x1f   :  { %159 = vmatpush.msra.mxu1 %v58_v51  ;;  %278 = vmatmul.msk.f32.vlgmr.msra.gmra.mxu2 %vm116_vm0, %v478_v52  ;;  %v63_v19 = vld [vmem:[%s628_s1 + $0x148] sm:$0xff]  ;;  %v61_v21 = vld [vmem:[%s628_s1 + $0x138] sm:$0xff] }
  0x20   :  { %218 = vmatpush.msrb.mxu2 %v79_v53  ;;  %137 = vmatpush.msra.mxu0 %v24_v54  ;;  %v95_v22 = vld [vmem:[%s628_s1 + $0x248] sm:$0xff]  ;;  %v93_v24 = vld [vmem:[%s628_s1 + $0x238] sm:$0xff] }
  0x21   :  { %160 = vmatpush.msra.mxu1 %v56_v55  ;;  %207 = vmatpush.msra.mxu3 %v23_v18  ;;  %v59_v23 = vld [vmem:[%s628_s1 + $0x128] sm:$0xff]  ;;  %v57_v25 = vld [vmem:[%s628_s1 + $0x118] sm:$0xff] }
  0x22   :  { %219 = vmatpush.msrb.mxu2 %v77_v57  ;;  %138 = vmatpush.msra.mxu0 %v22_v58  ;;  %v91_v26 = vld [vmem:[%s628_s1 + $0x228] sm:$0xff]  ;;  %v89_v28 = vld [vmem:[%s628_s1 + $0x218] sm:$0xff] }
  0x23   :  { %161 = vmatpush.msra.mxu1 %v54_v60  ;;  %139 = vmatmul.f32.vlgmr.msra.gmra.mxu0 %v16_v62  ;;  %v55_v27 = vld [vmem:[%s628_s1 + $0x108] sm:$0xff] }
  0x24   :  { %242 = vmatpush.msrb.mxu0 %v109_v59  ;;  %220 = vmatpush.msrb.mxu2 %v75_v61  ;;  %v87_v29 = vld [vmem:[%s628_s1 + $0x208] sm:$0xff] }
  0x25   :  { %162 = vmatmul.f32.vlgmr.msra.gmra.mxu1 %v524_v2  ;;  %208 = vmatmul.f32.vlgmr.msra.gmra.mxu3 %v16_v62 }
  0x26   :  { %243 = vmatpush.msrb.mxu0 %v107_v0  ;;  %221 = vmatpush.msrb.mxu2 %v73_v1 }
  0x27   :  { %282 = vmatpush.msrb.mxu1 %v109_v59  ;;  %279 = vmatmul.msk.f32.gmra.mxu2 %vm116_vm0, %v21_v9 }
  0x28   :  { %244 = vmatpush.msrb.mxu0 %v105_v4  ;;  %222 = vmatpush.msrb.mxu2 %v71_v5 }
  0x29   :  { %283 = vmatpush.msrb.mxu1 %v107_v0 }
  0x2a   :  { %245 = vmatpush.msrb.mxu0 %v103_v7  ;;  %223 = vmatpush.msrb.mxu2 %v69_v8 }
  0x2b   :  { %142 = vmatmul.f32.gmra.mxu0 %v19_v13  ;;  %284 = vmatpush.msrb.mxu1 %v105_v4 }
  0x2c   :  { %224 = vmatpush.msrb.mxu2 %v67_v11  ;;  %246 = vmatpush.msrb.mxu0 %v101_v12 }
  0x2d   :  { %165 = vmatmul.f32.gmra.mxu1 %v20_v17  ;;  %211 = vmatmul.f32.gmra.mxu3 %v19_v13 }
  0x2e   :  { %225 = vmatpush.msrb.mxu2 %v65_v15  ;;  %247 = vmatpush.msrb.mxu0 %v99_v16 }
  0x2f   :  { %285 = vmatpush.msrb.mxu1 %v103_v7 }
  0x30   :  { %226 = vmatpush.msrb.mxu2 %v63_v19  ;;  %248 = vmatpush.msrb.mxu0 %v97_v20 }
  0x31   :  { %286 = vmatpush.msrb.mxu1 %v101_v12 }
  0x32   :  { %227 = vmatpush.msrb.mxu2 %v61_v21  ;;  %249 = vmatpush.msrb.mxu0 %v95_v22 }
  0x33   :  { %287 = vmatpush.msrb.mxu1 %v99_v16 }
  0x34   :  { %228 = vmatpush.msrb.mxu2 %v59_v23  ;;  %250 = vmatpush.msrb.mxu0 %v93_v24 }
  0x35   :  { %288 = vmatpush.msrb.mxu1 %v97_v20 }
  0x36   :  { %229 = vmatpush.msrb.mxu2 %v57_v25  ;;  %251 = vmatpush.msrb.mxu0 %v91_v26 }
  0x37   :  { %289 = vmatpush.msrb.mxu1 %v95_v22 }
  0x38   :  { %230 = vmatpush.msrb.mxu2 %v55_v27  ;;  %252 = vmatpush.msrb.mxu0 %v89_v28 }
  0x39   :  { %231 = vmatmul.f32.vlgmr.msrb.gmra.mxu2 %v524_v2  ;;  %290 = vmatpush.msrb.mxu1 %v93_v24 }
  0x3a   :  { %253 = vmatpush.msrb.mxu0 %v87_v29 }
  0x3b   :  { %280 = vmatmul.msk.f32.vlgmr.msrb.gmra.mxu0 %vm116_vm0, %v478_v52  ;;  %291 = vmatpush.msrb.mxu1 %v91_v26 }
  0x3d   :  { %292 = vmatpush.msrb.mxu1 %v89_v28 }
  0x3f   :  { %293 = vmatpush.msrb.mxu1 %v87_v29 }
  0x40   :  { %281 = vmatmul.msk.f32.vlgmr.msrb.gmra.mxu1 %vm116_vm0, %v21_v9 }
  0x41   :  { %234 = vmatmul.f32.gmra.mxu2 %v20_v17 }
  0xa0   :  { %v140_v32 = vpop.f32.mrf.mxu0 }
  0xa1   :  { %v141_v33 = vadd.f32 %v140_v32, %v112_v31 }
  0xa2   :  { %v163_v34 = vpop.f32.mrf.mxu1  ;;  %v186_v35 = vpop.f32.mrf.mxu2 }
  0xa3   :  { %v164_v36 = vadd.f32 %v163_v34, %v141_v33 }
  0xa5   :  { %v187_v37 = vadd.f32 %v186_v35, %v164_v36 }
  0xa7   :  { %v261_v38 = vmax.f32 %v187_v37, 0.0 }
  0xa8   :  { %v143_v39 = vpop.f32.mrf.mxu0  ;;  %v209_v46 = vpop.f32.mrf.mxu3 }
  0xa9   :  { %265 = vst [vmem:[%s631_s3] sm:$0xff] %v261_v38  ;;  %v144_v40 = vadd.f32 %v143_v39, %v112_v31  ;;  %v210_v48 = vadd.f32 %v209_v46, %v113_v47 }
  0xaa   :  { %v166_v41 = vpop.f32.mrf.mxu1  ;;  %v189_v43 = vpop.f32.mrf.mxu2 }
  0xab   :  { %v167_v42 = vadd.f32 %v166_v41, %v144_v40 }
  0xad   :  { %v190_v44 = vadd.f32 %v189_v43, %v167_v42 }
  0xaf   :  { %v263_v45 = vmax.f32 %v190_v44, 0.0 }
  0xb0   :  { %v212_v52 = vpop.f32.mrf.mxu3 }
  0xb1   :  { %266 = vst [vmem:[%s631_s3 + $0x8] sm:$0xff] %v263_v45  ;;  %v213_v55 = vadd.f32 %v212_v52, %v113_v47 }
  0xb8   :  { %v255_v50 = vpop.f32.mrf.mxu0 }
  0xbc   :  { %v232_v49 = vpop.f32.mrf.mxu2 }
  0xbd   :  { %v233_v51 = vadd.f32 %v232_v49, %v210_v48  ;;  %v258_v57 = vpop.f32.mrf.mxu1 }
  0xbf   :  { %v256_v53 = vadd.f32 %v255_v50, %v233_v51 }
  0xc1   :  { %v262_v54 = vmax.f32 %v256_v53, 0.0 }
  0xc3   :  { %268 = vst.msk [vmem:[%s632_s4] sm:$0xff] %vm267_vm1, %v262_v54 }
  0xc4   :  { %v235_v56 = vpop.f32.mrf.mxu2 }
  0xc5   :  { %v236_v58 = vadd.f32 %v235_v56, %v213_v55 }
  0xc7   :  { %v259_v59 = vadd.f32 %v258_v57, %v236_v58 }
  0xc9   :  { %v264_v60 = vmax.f32 %v259_v59, 0.0 }
  0xcb   :  { %269 = vst.msk [vmem:[%s632_s4 + $0x8] sm:$0xff] %vm267_vm1, %v264_v60 }

</bundles_post_ra>
